<compile_context>
chip_gen: v6e
topology: v6e:2x2x1
jax: 0.10.0
libtpu: 0.0.40
codegen_flags: <defaults>
</compile_context>

<pallas_src>
import jax
import jax.numpy as jnp
from jax.experimental import pallas as pl
from jax.experimental.pallas import tpu as pltpu

_LANE = 128
_SUBLANE = 8
_VREG_ELEMS = _LANE * _SUBLANE

# Tiled-path constants (future-proofing for large slabs only):
#   1024 x 128 f32 block = 512 KiB; 2 inputs + 1 output, double-buffered
#   (6 live blocks) = 3 MiB VMEM -- safe under the 32 MiB default scoped
#   budget on v5e/v6e AND the tighter v7x (64 MiB physical) budget.
_TILE_ROWS = 1024
_TILED_THRESHOLD_BYTES = 4 * 1024 * 1024  # per-operand bytes


def _add_kernel(a_ref, b_ref, o_ref):
    # Straight-line elementwise add on the VMEM-resident block (pure VPU work).
    o_ref[...] = a_ref[...] + b_ref[...]


def pallas_add(a: jax.Array, b: jax.Array) -> jax.Array:
    """Elementwise add of two identically-shaped arrays via a Pallas TPU kernel."""
    assert a.shape == b.shape and a.dtype == b.dtype
    orig_shape = a.shape
    total = a.size
    itemsize = jnp.dtype(a.dtype).itemsize

    # Build a lane-dense, sublane-aligned (rows, 128) view. If the element
    # count is not a multiple of 8*128, pad the flattened slab so every
    # load/store is still a full unmasked vreg, then slice back at the end.
    if total % _VREG_ELEMS != 0:
        padded = ((total + _VREG_ELEMS - 1) // _VREG_ELEMS) * _VREG_ELEMS
        a_flat = jnp.pad(a.reshape(-1), (0, padded - total))
        b_flat = jnp.pad(b.reshape(-1), (0, padded - total))
    else:
        padded = total
        a_flat = a.reshape(-1)
        b_flat = b.reshape(-1)

    rows = padded // _LANE
    a2 = a_flat.reshape(rows, _LANE)
    b2 = b_flat.reshape(rows, _LANE)

    cost = pl.CostEstimate(
        flops=total,
        bytes_accessed=3 * total * itemsize,
        transcendentals=0,
    )

    op_bytes = padded * itemsize
    use_tiled = op_bytes > _TILED_THRESHOLD_BYTES and rows % _TILE_ROWS == 0

    if use_tiled:
        # Large-slab path: pipelined 1024x128 blocks, sharded across cores.
        out2 = pl.pallas_call(
            _add_kernel,
            out_shape=jax.ShapeDtypeStruct((rows, _LANE), a.dtype),
            grid=(rows // _TILE_ROWS,),
            in_specs=[
                pl.BlockSpec((_TILE_ROWS, _LANE), lambda i: (i, 0)),
                pl.BlockSpec((_TILE_ROWS, _LANE), lambda i: (i, 0)),
            ],
            out_specs=pl.BlockSpec((_TILE_ROWS, _LANE), lambda i: (i, 0)),
            compiler_params=pltpu.CompilerParams(
                dimension_semantics=("parallel",)),
            input_output_aliases={0: 0},
            cost_estimate=cost,
        )(a2, b2)
    else:
        # Small-slab path: whole slab resident in VMEM, no grid bookkeeping.
        out2 = pl.pallas_call(
            _add_kernel,
            out_shape=jax.ShapeDtypeStruct((rows, _LANE), a.dtype),
            in_specs=[
                pl.BlockSpec(memory_space=pltpu.MemorySpace.VMEM),
                pl.BlockSpec(memory_space=pltpu.MemorySpace.VMEM),
            ],
            out_specs=pl.BlockSpec(memory_space=pltpu.MemorySpace.VMEM),
            input_output_aliases={0: 0},
            cost_estimate=cost,
        )(a2, b2)

    out_flat = out2.reshape(-1)
    if padded != total:
        out_flat = out_flat[:total]
    return out_flat.reshape(orig_shape)


if __name__ == "__main__":
    key = jax.random.PRNGKey(0)
    k1, k2 = jax.random.split(key)

    # Shapes implied by the module's forward: [1, 14, 14, 512] (already small).
    x456 = jax.random.normal(k1, (1, 14, 14, 512), dtype=jnp.float32)
    x470 = jax.random.normal(k2, (1, 14, 14, 512), dtype=jnp.float32)

    # Compute the reference BEFORE the kernel call (the kernel aliases its
    # output onto the first operand's buffer via input_output_aliases).
    ref = x456 + x470

    out = pallas_add(x456, x470)
    jax.block_until_ready(out)

    assert out.shape == ref.shape
    assert jnp.allclose(out, ref, atol=1e-6, rtol=1e-6), "mismatch vs reference add"

    print("KERNEL_OK")
</pallas_src>

<mosaic_0001>
module attributes {stable_mosaic.version = 11 : i64} {
  func.func @_add_kernel(%arg0: memref<784x128xf32, #tpu.memory_space<vmem>>, %arg1: memref<784x128xf32, #tpu.memory_space<vmem>>, %arg2: memref<784x128xf32, #tpu.memory_space<vmem>>) attributes {dimension_semantics = [], scalar_prefetch = 0 : i64, scratch_operands = 0 : i64, tpu.core_type = #tpu.core_type<tc>} {
    %c0 = arith.constant 0 : index
    %c0_0 = arith.constant 0 : index
    %0 = vector.load %arg0[%c0, %c0_0] : memref<784x128xf32, #tpu.memory_space<vmem>>, vector<784x128xf32>
    %c0_1 = arith.constant 0 : index
    %c0_2 = arith.constant 0 : index
    %1 = vector.load %arg1[%c0_1, %c0_2] : memref<784x128xf32, #tpu.memory_space<vmem>>, vector<784x128xf32>
    %2 = arith.addf %0, %1 : vector<784x128xf32>
    %c0_3 = arith.constant 0 : index
    %c0_4 = arith.constant 0 : index
    %3 = vector.load %arg2[%c0_3, %c0_4] : memref<784x128xf32, #tpu.memory_space<vmem>>, vector<784x128xf32>
    tpu.vector_store %arg2[%c0_3, %c0_4], %2 {strides = array<i32>} : memref<784x128xf32, #tpu.memory_space<vmem>>, vector<784x128xf32>,
    return
  }
}

</mosaic_0001>

<bundles_post_ra>
// kernel: tpu_custom_call.1
= control target key start
LH: loop header
LB: loop body
LE: loop exit
PB: predicated region body
PF: predicated region fallthrough
CT: control target
= control target key end

     0   :  { %7 = vsyncpa [#allocation3], 0  ;;  %s808_s0 = inlined_call_operand.hbm [shape: f32[784,128], index: 0, kind: input, shape index: {}, may-alias: {0,2}]   ;;  %s809_s1 = inlined_call_operand.vmem [shape: f32[784,128], index: 1, kind: input, shape index: {}]   ;;  %s810_s2 = inlined_call_operand.hbm [shape: f32[784,128], index: 2, kind: output, shape index: {}, may-alias: {0,2}]  }
   0x1   :  { %8 = vsyncpa [#allocation4], 0  ;;  %s483_s9 = smov [#allocation2]  }
   0x2   :  { %s14_s10 = sshll.u32 %s483_s9, 4  ;;  %s15_s10 = int_to_ptr.vmem [resolvable:$true] %s14_s10 }
   0x3   :  { %s447_s11 = scalar_lea.vmem %s15_s10, 12544  ;;  %p452_p1 = scmp.lt.s32.totalorder %s15_s10, %s15_s10 }
   0x4   :  { %p448_p0 = scmp.ne.s32.totalorder %s15_s10, %s447_s11  ;;  %p453_p2 = scmp.lt.s32.totalorder %s447_s11, %s447_s11 }
   0x6   :  { %p454_p3 = por %p453_p2, %p452_p1 }
   0x8   :  { %p455_p4 = pnand %p454_p3, %p448_p0 }
   0xa   :  { %458 = shalt.err (!%p455_p4)
}
   0xb   :  { %s484_s12 = smov 128   ;;  %s485_s13 = smov 8  }
   0xc   :  { %20 = dma.hbm_to_vmem [thread:$0]  %s808_s0, 12544, %s15_s10, [#allocation3], %s484_s12, %s484_s12, %s485_s13  }
   0xd   :  { %479 = dma.done.wait [#allocation3], 12544  }
   0xe   :  { %480 = vsyncadd [#allocation3], 4294954752  ;;  %v26_v0 = vld [vmem:[#allocation2] sm:$0xff]  ;;  %v27_v2 = vld [vmem:[#allocation2 + $0x8] sm:$0xff]  ;;  %s486_s19 = smov [#allocation5]  }
   0xf   :  { %v124_v1 = vld [vmem:[%s809_s1] sm:$0xff]  ;;  %v125_v4 = vld [vmem:[%s809_s1 + $0x8] sm:$0xff]  ;;  %v28_v5 = vld [vmem:[#allocation2 + $0x10] sm:$0xff]  ;;  %s423_s20 = sshll.u32 %s486_s19, 4  ;;  %s424_s20 = int_to_ptr.vmem [resolvable:$true] %s423_s20 }
  0x10   :  { %v222_v3 = vadd.f32 %v124_v1, %v26_v0  ;;  %v126_v6 = vld [vmem:[%s809_s1 + $0x10] sm:$0xff]  ;;  %v223_v7 = vadd.f32 %v125_v4, %v27_v2  ;;  %v29_v9 = vld [vmem:[#allocation2 + $0x18] sm:$0xff]  ;;  %v30_v11 = vld [vmem:[#allocation2 + $0x20] sm:$0xff]  ;;  %s459_s24 = scalar_lea.vmem %s424_s20, 12544  ;;  %p464_p6 = scmp.lt.s32.totalorder %s424_s20, %s424_s20 }
  0x11   :  { %v224_v8 = vadd.f32 %v126_v6, %v28_v5  ;;  %v127_v10 = vld [vmem:[%s809_s1 + $0x18] sm:$0xff]  ;;  %v128_v13 = vld [vmem:[%s809_s1 + $0x20] sm:$0xff]  ;;  %v31_v14 = vld [vmem:[#allocation2 + $0x28] sm:$0xff]  ;;  %p460_p5 = scmp.ne.s32.totalorder %s424_s20, %s459_s24  ;;  %p465_p7 = scmp.lt.s32.totalorder %s459_s24, %s459_s24 }
  0x12   :  { %320 = vst [vmem:[#allocation5] sm:$0xff] %v222_v3  ;;  %v225_v12 = vadd.f32 %v127_v10, %v29_v9  ;;  %v129_v15 = vld [vmem:[%s809_s1 + $0x28] sm:$0xff]  ;;  %321 = vst [vmem:[#allocation5 + $0x8] sm:$0xff] %v223_v7  ;;  %v226_v16 = vadd.f32 %v128_v13, %v30_v11  ;;  %v32_v18 = vld [vmem:[#allocation2 + $0x30] sm:$0xff] }
  0x13   :  { %322 = vst [vmem:[#allocation5 + $0x10] sm:$0xff] %v224_v8  ;;  %v227_v17 = vadd.f32 %v129_v15, %v31_v14  ;;  %v130_v19 = vld [vmem:[%s809_s1 + $0x30] sm:$0xff]  ;;  %v33_v20 = vld [vmem:[#allocation2 + $0x38] sm:$0xff]  ;;  %v34_v23 = vld [vmem:[#allocation2 + $0x40] sm:$0xff]  ;;  %p466_p8 = por %p465_p7, %p464_p6 }
  0x14   :  { %323 = vst [vmem:[#allocation5 + $0x18] sm:$0xff] %v225_v12  ;;  %v228_v21 = vadd.f32 %v130_v19, %v32_v18  ;;  %v131_v22 = vld [vmem:[%s809_s1 + $0x38] sm:$0xff]  ;;  %v132_v24 = vld [vmem:[%s809_s1 + $0x40] sm:$0xff]  ;;  %324 = vst [vmem:[#allocation5 + $0x20] sm:$0xff] %v226_v16 }
  0x15   :  { %325 = vst [vmem:[#allocation5 + $0x28] sm:$0xff] %v227_v17  ;;  %v229_v25 = vadd.f32 %v131_v22, %v33_v20  ;;  %v230_v26 = vadd.f32 %v132_v24, %v34_v23  ;;  %v35_v27 = vld [vmem:[#allocation2 + $0x48] sm:$0xff]  ;;  %v36_v29 = vld [vmem:[#allocation2 + $0x50] sm:$0xff]  ;;  %v37_v32 = vld [vmem:[#allocation2 + $0x58] sm:$0xff]  ;;  %p467_p9 = pnand %p466_p8, %p460_p5 }
  0x16   :  { %v133_v28 = vld [vmem:[%s809_s1 + $0x48] sm:$0xff]  ;;  %326 = vst [vmem:[#allocation5 + $0x30] sm:$0xff] %v228_v21  ;;  %v134_v31 = vld [vmem:[%s809_s1 + $0x50] sm:$0xff]  ;;  %v135_v33 = vld [vmem:[%s809_s1 + $0x58] sm:$0xff] }
  0x17   :  { %v231_v30 = vadd.f32 %v133_v28, %v35_v27  ;;  %327 = vst [vmem:[#allocation5 + $0x38] sm:$0xff] %v229_v25  ;;  %328 = vst [vmem:[#allocation5 + $0x40] sm:$0xff] %v230_v26  ;;  %v232_v34 = vadd.f32 %v134_v31, %v36_v29  ;;  %v233_v35 = vadd.f32 %v135_v33, %v37_v32  ;;  %v38_v36 = vld [vmem:[#allocation2 + $0x60] sm:$0xff]  ;;  %v39_v38 = vld [vmem:[#allocation2 + $0x68] sm:$0xff] }
  0x18   :  { %v136_v37 = vld [vmem:[%s809_s1 + $0x60] sm:$0xff]  ;;  %v137_v40 = vld [vmem:[%s809_s1 + $0x68] sm:$0xff]  ;;  %v40_v41 = vld [vmem:[#allocation2 + $0x70] sm:$0xff] }
  0x19   :  { %329 = vst [vmem:[#allocation5 + $0x48] sm:$0xff] %v231_v30  ;;  %v234_v39 = vadd.f32 %v136_v37, %v38_v36  ;;  %v138_v42 = vld [vmem:[%s809_s1 + $0x70] sm:$0xff]  ;;  %330 = vst [vmem:[#allocation5 + $0x50] sm:$0xff] %v232_v34  ;;  %v235_v43 = vadd.f32 %v137_v40, %v39_v38  ;;  %v41_v45 = vld [vmem:[#allocation2 + $0x78] sm:$0xff] }
  0x1a   :  { %331 = vst [vmem:[#allocation5 + $0x58] sm:$0xff] %v233_v35  ;;  %v236_v44 = vadd.f32 %v138_v42, %v40_v41  ;;  %v139_v46 = vld [vmem:[%s809_s1 + $0x78] sm:$0xff]  ;;  %v42_v47 = vld [vmem:[#allocation2 + $0x80] sm:$0xff]  ;;  %v43_v50 = vld [vmem:[#allocation2 + $0x88] sm:$0xff] }
  0x1b   :  { %332 = vst [vmem:[#allocation5 + $0x60] sm:$0xff] %v234_v39  ;;  %v237_v48 = vadd.f32 %v139_v46, %v41_v45  ;;  %v140_v49 = vld [vmem:[%s809_s1 + $0x80] sm:$0xff]  ;;  %v141_v51 = vld [vmem:[%s809_s1 + $0x88] sm:$0xff]  ;;  %333 = vst [vmem:[#allocation5 + $0x68] sm:$0xff] %v235_v43 }
  0x1c   :  { %334 = vst [vmem:[#allocation5 + $0x70] sm:$0xff] %v236_v44  ;;  %v238_v52 = vadd.f32 %v140_v49, %v42_v47  ;;  %v239_v53 = vadd.f32 %v141_v51, %v43_v50  ;;  %v44_v54 = vld [vmem:[#allocation2 + $0x90] sm:$0xff]  ;;  %v45_v56 = vld [vmem:[#allocation2 + $0x98] sm:$0xff]  ;;  %v46_v59 = vld [vmem:[#allocation2 + $0xa0] sm:$0xff] }
  0x1d   :  { %v142_v55 = vld [vmem:[%s809_s1 + $0x90] sm:$0xff]  ;;  %335 = vst [vmem:[#allocation5 + $0x78] sm:$0xff] %v237_v48  ;;  %v143_v58 = vld [vmem:[%s809_s1 + $0x98] sm:$0xff]  ;;  %v144_v60 = vld [vmem:[%s809_s1 + $0xa0] sm:$0xff] }
  0x1e   :  { %v240_v57 = vadd.f32 %v142_v55, %v44_v54  ;;  %336 = vst [vmem:[#allocation5 + $0x80] sm:$0xff] %v238_v52  ;;  %337 = vst [vmem:[#allocation5 + $0x88] sm:$0xff] %v239_v53  ;;  %v241_v61 = vadd.f32 %v143_v58, %v45_v56  ;;  %v242_v62 = vadd.f32 %v144_v60, %v46_v59  ;;  %v47_v63 = vld [vmem:[#allocation2 + $0xa8] sm:$0xff]  ;;  %v48_v1 = vld [vmem:[#allocation2 + $0xb0] sm:$0xff] }
  0x1f   :  { %v145_v0 = vld [vmem:[%s809_s1 + $0xa8] sm:$0xff]  ;;  %v146_v3 = vld [vmem:[%s809_s1 + $0xb0] sm:$0xff]  ;;  %v49_v4 = vld [vmem:[#allocation2 + $0xb8] sm:$0xff] }
  0x20   :  { %338 = vst [vmem:[#allocation5 + $0x90] sm:$0xff] %v240_v57  ;;  %v243_v2 = vadd.f32 %v145_v0, %v47_v63  ;;  %v147_v5 = vld [vmem:[%s809_s1 + $0xb8] sm:$0xff]  ;;  %339 = vst [vmem:[#allocation5 + $0x98] sm:$0xff] %v241_v61  ;;  %v244_v6 = vadd.f32 %v146_v3, %v48_v1  ;;  %v50_v8 = vld [vmem:[#allocation2 + $0xc0] sm:$0xff] }
  0x21   :  { %340 = vst [vmem:[#allocation5 + $0xa0] sm:$0xff] %v242_v62  ;;  %v245_v7 = vadd.f32 %v147_v5, %v49_v4  ;;  %v148_v9 = vld [vmem:[%s809_s1 + $0xc0] sm:$0xff]  ;;  %v51_v10 = vld [vmem:[#allocation2 + $0xc8] sm:$0xff]  ;;  %v52_v13 = vld [vmem:[#allocation2 + $0xd0] sm:$0xff] }
  0x22   :  { %341 = vst [vmem:[#allocation5 + $0xa8] sm:$0xff] %v243_v2  ;;  %v246_v11 = vadd.f32 %v148_v9, %v50_v8  ;;  %v149_v12 = vld [vmem:[%s809_s1 + $0xc8] sm:$0xff]  ;;  %v150_v14 = vld [vmem:[%s809_s1 + $0xd0] sm:$0xff]  ;;  %342 = vst [vmem:[#allocation5 + $0xb0] sm:$0xff] %v244_v6 }
  0x23   :  { %343 = vst [vmem:[#allocation5 + $0xb8] sm:$0xff] %v245_v7  ;;  %v247_v15 = vadd.f32 %v149_v12, %v51_v10  ;;  %v248_v16 = vadd.f32 %v150_v14, %v52_v13  ;;  %v53_v17 = vld [vmem:[#allocation2 + $0xd8] sm:$0xff]  ;;  %v54_v19 = vld [vmem:[#allocation2 + $0xe0] sm:$0xff]  ;;  %v55_v22 = vld [vmem:[#allocation2 + $0xe8] sm:$0xff] }
  0x24   :  { %v151_v18 = vld [vmem:[%s809_s1 + $0xd8] sm:$0xff]  ;;  %344 = vst [vmem:[#allocation5 + $0xc0] sm:$0xff] %v246_v11  ;;  %v152_v21 = vld [vmem:[%s809_s1 + $0xe0] sm:$0xff]  ;;  %v153_v23 = vld [vmem:[%s809_s1 + $0xe8] sm:$0xff] }
  0x25   :  { %v249_v20 = vadd.f32 %v151_v18, %v53_v17  ;;  %345 = vst [vmem:[#allocation5 + $0xc8] sm:$0xff] %v247_v15  ;;  %346 = vst [vmem:[#allocation5 + $0xd0] sm:$0xff] %v248_v16  ;;  %v250_v24 = vadd.f32 %v152_v21, %v54_v19  ;;  %v251_v25 = vadd.f32 %v153_v23, %v55_v22  ;;  %v56_v26 = vld [vmem:[#allocation2 + $0xf0] sm:$0xff]  ;;  %v57_v28 = vld [vmem:[#allocation2 + $0xf8] sm:$0xff] }
  0x26   :  { %v154_v27 = vld [vmem:[%s809_s1 + $0xf0] sm:$0xff]  ;;  %v155_v30 = vld [vmem:[%s809_s1 + $0xf8] sm:$0xff]  ;;  %v58_v31 = vld [vmem:[#allocation2 + $0x100] sm:$0xff] }
  0x27   :  { %347 = vst [vmem:[#allocation5 + $0xd8] sm:$0xff] %v249_v20  ;;  %v252_v29 = vadd.f32 %v154_v27, %v56_v26  ;;  %v156_v32 = vld [vmem:[%s809_s1 + $0x100] sm:$0xff]  ;;  %348 = vst [vmem:[#allocation5 + $0xe0] sm:$0xff] %v250_v24  ;;  %v253_v33 = vadd.f32 %v155_v30, %v57_v28  ;;  %v59_v35 = vld [vmem:[#allocation2 + $0x108] sm:$0xff] }
  0x28   :  { %349 = vst [vmem:[#allocation5 + $0xe8] sm:$0xff] %v251_v25  ;;  %v254_v34 = vadd.f32 %v156_v32, %v58_v31  ;;  %v157_v36 = vld [vmem:[%s809_s1 + $0x108] sm:$0xff]  ;;  %v60_v37 = vld [vmem:[#allocation2 + $0x110] sm:$0xff]  ;;  %v61_v40 = vld [vmem:[#allocation2 + $0x118] sm:$0xff] }
  0x29   :  { %350 = vst [vmem:[#allocation5 + $0xf0] sm:$0xff] %v252_v29  ;;  %v255_v38 = vadd.f32 %v157_v36, %v59_v35  ;;  %v158_v39 = vld [vmem:[%s809_s1 + $0x110] sm:$0xff]  ;;  %v159_v41 = vld [vmem:[%s809_s1 + $0x118] sm:$0xff]  ;;  %351 = vst [vmem:[#allocation5 + $0xf8] sm:$0xff] %v253_v33 }
  0x2a   :  { %352 = vst [vmem:[#allocation5 + $0x100] sm:$0xff] %v254_v34  ;;  %v256_v42 = vadd.f32 %v158_v39, %v60_v37  ;;  %v257_v43 = vadd.f32 %v159_v41, %v61_v40  ;;  %v62_v44 = vld [vmem:[#allocation2 + $0x120] sm:$0xff]  ;;  %v63_v46 = vld [vmem:[#allocation2 + $0x128] sm:$0xff]  ;;  %v64_v49 = vld [vmem:[#allocation2 + $0x130] sm:$0xff] }
  0x2b   :  { %v160_v45 = vld [vmem:[%s809_s1 + $0x120] sm:$0xff]  ;;  %353 = vst [vmem:[#allocation5 + $0x108] sm:$0xff] %v255_v38  ;;  %v161_v48 = vld [vmem:[%s809_s1 + $0x128] sm:$0xff]  ;;  %v162_v50 = vld [vmem:[%s809_s1 + $0x130] sm:$0xff] }
  0x2c   :  { %v258_v47 = vadd.f32 %v160_v45, %v62_v44  ;;  %354 = vst [vmem:[#allocation5 + $0x110] sm:$0xff] %v256_v42  ;;  %355 = vst [vmem:[#allocation5 + $0x118] sm:$0xff] %v257_v43  ;;  %v259_v51 = vadd.f32 %v161_v48, %v63_v46  ;;  %v260_v52 = vadd.f32 %v162_v50, %v64_v49  ;;  %v65_v53 = vld [vmem:[#allocation2 + $0x138] sm:$0xff]  ;;  %v66_v55 = vld [vmem:[#allocation2 + $0x140] sm:$0xff] }
  0x2d   :  { %v163_v54 = vld [vmem:[%s809_s1 + $0x138] sm:$0xff]  ;;  %v164_v57 = vld [vmem:[%s809_s1 + $0x140] sm:$0xff]  ;;  %v67_v58 = vld [vmem:[#allocation2 + $0x148] sm:$0xff] }
  0x2e   :  { %356 = vst [vmem:[#allocation5 + $0x120] sm:$0xff] %v258_v47  ;;  %v261_v56 = vadd.f32 %v163_v54, %v65_v53  ;;  %v165_v59 = vld [vmem:[%s809_s1 + $0x148] sm:$0xff]  ;;  %357 = vst [vmem:[#allocation5 + $0x128] sm:$0xff] %v259_v51  ;;  %v262_v60 = vadd.f32 %v164_v57, %v66_v55  ;;  %v68_v62 = vld [vmem:[#allocation2 + $0x150] sm:$0xff] }
  0x2f   :  { %358 = vst [vmem:[#allocation5 + $0x130] sm:$0xff] %v260_v52  ;;  %v263_v61 = vadd.f32 %v165_v59, %v67_v58  ;;  %v166_v63 = vld [vmem:[%s809_s1 + $0x150] sm:$0xff]  ;;  %v69_v0 = vld [vmem:[#allocation2 + $0x158] sm:$0xff]  ;;  %v70_v3 = vld [vmem:[#allocation2 + $0x160] sm:$0xff] }
  0x30   :  { %359 = vst [vmem:[#allocation5 + $0x138] sm:$0xff] %v261_v56  ;;  %v264_v1 = vadd.f32 %v166_v63, %v68_v62  ;;  %v167_v2 = vld [vmem:[%s809_s1 + $0x158] sm:$0xff]  ;;  %v168_v4 = vld [vmem:[%s809_s1 + $0x160] sm:$0xff]  ;;  %360 = vst [vmem:[#allocation5 + $0x140] sm:$0xff] %v262_v60 }
  0x31   :  { %361 = vst [vmem:[#allocation5 + $0x148] sm:$0xff] %v263_v61  ;;  %v265_v5 = vadd.f32 %v167_v2, %v69_v0  ;;  %v266_v6 = vadd.f32 %v168_v4, %v70_v3  ;;  %v71_v7 = vld [vmem:[#allocation2 + $0x168] sm:$0xff]  ;;  %v72_v9 = vld [vmem:[#allocation2 + $0x170] sm:$0xff]  ;;  %v73_v12 = vld [vmem:[#allocation2 + $0x178] sm:$0xff] }
  0x32   :  { %v169_v8 = vld [vmem:[%s809_s1 + $0x168] sm:$0xff]  ;;  %362 = vst [vmem:[#allocation5 + $0x150] sm:$0xff] %v264_v1  ;;  %v170_v11 = vld [vmem:[%s809_s1 + $0x170] sm:$0xff]  ;;  %v171_v13 = vld [vmem:[%s809_s1 + $0x178] sm:$0xff] }
  0x33   :  { %v267_v10 = vadd.f32 %v169_v8, %v71_v7  ;;  %363 = vst [vmem:[#allocation5 + $0x158] sm:$0xff] %v265_v5  ;;  %364 = vst [vmem:[#allocation5 + $0x160] sm:$0xff] %v266_v6  ;;  %v268_v14 = vadd.f32 %v170_v11, %v72_v9  ;;  %v269_v15 = vadd.f32 %v171_v13, %v73_v12  ;;  %v74_v16 = vld [vmem:[#allocation2 + $0x180] sm:$0xff]  ;;  %v75_v18 = vld [vmem:[#allocation2 + $0x188] sm:$0xff] }
  0x34   :  { %v172_v17 = vld [vmem:[%s809_s1 + $0x180] sm:$0xff]  ;;  %v173_v20 = vld [vmem:[%s809_s1 + $0x188] sm:$0xff]  ;;  %v76_v21 = vld [vmem:[#allocation2 + $0x190] sm:$0xff] }
  0x35   :  { %365 = vst [vmem:[#allocation5 + $0x168] sm:$0xff] %v267_v10  ;;  %v270_v19 = vadd.f32 %v172_v17, %v74_v16  ;;  %v174_v22 = vld [vmem:[%s809_s1 + $0x190] sm:$0xff]  ;;  %366 = vst [vmem:[#allocation5 + $0x170] sm:$0xff] %v268_v14  ;;  %v271_v23 = vadd.f32 %v173_v20, %v75_v18  ;;  %v77_v25 = vld [vmem:[#allocation2 + $0x198] sm:$0xff] }
  0x36   :  { %367 = vst [vmem:[#allocation5 + $0x178] sm:$0xff] %v269_v15  ;;  %v272_v24 = vadd.f32 %v174_v22, %v76_v21  ;;  %v175_v26 = vld [vmem:[%s809_s1 + $0x198] sm:$0xff]  ;;  %v78_v27 = vld [vmem:[#allocation2 + $0x1a0] sm:$0xff]  ;;  %v79_v30 = vld [vmem:[#allocation2 + $0x1a8] sm:$0xff] }
  0x37   :  { %368 = vst [vmem:[#allocation5 + $0x180] sm:$0xff] %v270_v19  ;;  %v273_v28 = vadd.f32 %v175_v26, %v77_v25  ;;  %v176_v29 = vld [vmem:[%s809_s1 + $0x1a0] sm:$0xff]  ;;  %v177_v31 = vld [vmem:[%s809_s1 + $0x1a8] sm:$0xff]  ;;  %369 = vst [vmem:[#allocation5 + $0x188] sm:$0xff] %v271_v23 }
  0x38   :  { %370 = vst [vmem:[#allocation5 + $0x190] sm:$0xff] %v272_v24  ;;  %v274_v32 = vadd.f32 %v176_v29, %v78_v27  ;;  %v275_v33 = vadd.f32 %v177_v31, %v79_v30  ;;  %v80_v34 = vld [vmem:[#allocation2 + $0x1b0] sm:$0xff]  ;;  %v81_v36 = vld [vmem:[#allocation2 + $0x1b8] sm:$0xff]  ;;  %v82_v39 = vld [vmem:[#allocation2 + $0x1c0] sm:$0xff] }
  0x39   :  { %v178_v35 = vld [vmem:[%s809_s1 + $0x1b0] sm:$0xff]  ;;  %371 = vst [vmem:[#allocation5 + $0x198] sm:$0xff] %v273_v28  ;;  %v179_v38 = vld [vmem:[%s809_s1 + $0x1b8] sm:$0xff]  ;;  %v180_v40 = vld [vmem:[%s809_s1 + $0x1c0] sm:$0xff] }
  0x3a   :  { %v276_v37 = vadd.f32 %v178_v35, %v80_v34  ;;  %372 = vst [vmem:[#allocation5 + $0x1a0] sm:$0xff] %v274_v32  ;;  %373 = vst [vmem:[#allocation5 + $0x1a8] sm:$0xff] %v275_v33  ;;  %v277_v41 = vadd.f32 %v179_v38, %v81_v36  ;;  %v278_v42 = vadd.f32 %v180_v40, %v82_v39  ;;  %v83_v43 = vld [vmem:[#allocation2 + $0x1c8] sm:$0xff]  ;;  %v84_v45 = vld [vmem:[#allocation2 + $0x1d0] sm:$0xff] }
  0x3b   :  { %v181_v44 = vld [vmem:[%s809_s1 + $0x1c8] sm:$0xff]  ;;  %v182_v47 = vld [vmem:[%s809_s1 + $0x1d0] sm:$0xff]  ;;  %v85_v48 = vld [vmem:[#allocation2 + $0x1d8] sm:$0xff] }
  0x3c   :  { %374 = vst [vmem:[#allocation5 + $0x1b0] sm:$0xff] %v276_v37  ;;  %v279_v46 = vadd.f32 %v181_v44, %v83_v43  ;;  %v183_v49 = vld [vmem:[%s809_s1 + $0x1d8] sm:$0xff]  ;;  %375 = vst [vmem:[#allocation5 + $0x1b8] sm:$0xff] %v277_v41  ;;  %v280_v50 = vadd.f32 %v182_v47, %v84_v45  ;;  %v86_v52 = vld [vmem:[#allocation2 + $0x1e0] sm:$0xff] }
  0x3d   :  { %376 = vst [vmem:[#allocation5 + $0x1c0] sm:$0xff] %v278_v42  ;;  %v281_v51 = vadd.f32 %v183_v49, %v85_v48  ;;  %v184_v53 = vld [vmem:[%s809_s1 + $0x1e0] sm:$0xff]  ;;  %v87_v54 = vld [vmem:[#allocation2 + $0x1e8] sm:$0xff]  ;;  %v88_v57 = vld [vmem:[#allocation2 + $0x1f0] sm:$0xff] }
  0x3e   :  { %377 = vst [vmem:[#allocation5 + $0x1c8] sm:$0xff] %v279_v46  ;;  %v282_v55 = vadd.f32 %v184_v53, %v86_v52  ;;  %v185_v56 = vld [vmem:[%s809_s1 + $0x1e8] sm:$0xff]  ;;  %v186_v58 = vld [vmem:[%s809_s1 + $0x1f0] sm:$0xff]  ;;  %378 = vst [vmem:[#allocation5 + $0x1d0] sm:$0xff] %v280_v50 }
  0x3f   :  { %379 = vst [vmem:[#allocation5 + $0x1d8] sm:$0xff] %v281_v51  ;;  %v283_v59 = vadd.f32 %v185_v56, %v87_v54  ;;  %v284_v60 = vadd.f32 %v186_v58, %v88_v57  ;;  %v89_v61 = vld [vmem:[#allocation2 + $0x1f8] sm:$0xff]  ;;  %v90_v63 = vld [vmem:[#allocation2 + $0x200] sm:$0xff]  ;;  %v91_v2 = vld [vmem:[#allocation2 + $0x208] sm:$0xff] }
  0x40   :  { %v187_v62 = vld [vmem:[%s809_s1 + $0x1f8] sm:$0xff]  ;;  %380 = vst [vmem:[#allocation5 + $0x1e0] sm:$0xff] %v282_v55  ;;  %v188_v1 = vld [vmem:[%s809_s1 + $0x200] sm:$0xff]  ;;  %v189_v3 = vld [vmem:[%s809_s1 + $0x208] sm:$0xff] }
  0x41   :  { %v285_v0 = vadd.f32 %v187_v62, %v89_v61  ;;  %381 = vst [vmem:[#allocation5 + $0x1e8] sm:$0xff] %v283_v59  ;;  %382 = vst [vmem:[#allocation5 + $0x1f0] sm:$0xff] %v284_v60  ;;  %v286_v4 = vadd.f32 %v188_v1, %v90_v63  ;;  %v287_v5 = vadd.f32 %v189_v3, %v91_v2  ;;  %v92_v6 = vld [vmem:[#allocation2 + $0x210] sm:$0xff]  ;;  %v93_v8 = vld [vmem:[#allocation2 + $0x218] sm:$0xff] }
  0x42   :  { %v190_v7 = vld [vmem:[%s809_s1 + $0x210] sm:$0xff]  ;;  %v191_v10 = vld [vmem:[%s809_s1 + $0x218] sm:$0xff]  ;;  %v94_v11 = vld [vmem:[#allocation2 + $0x220] sm:$0xff] }
  0x43   :  { %383 = vst [vmem:[#allocation5 + $0x1f8] sm:$0xff] %v285_v0  ;;  %v288_v9 = vadd.f32 %v190_v7, %v92_v6  ;;  %v192_v12 = vld [vmem:[%s809_s1 + $0x220] sm:$0xff]  ;;  %384 = vst [vmem:[#allocation5 + $0x200] sm:$0xff] %v286_v4  ;;  %v289_v13 = vadd.f32 %v191_v10, %v93_v8  ;;  %v95_v15 = vld [vmem:[#allocation2 + $0x228] sm:$0xff] }
  0x44   :  { %385 = vst [vmem:[#allocation5 + $0x208] sm:$0xff] %v287_v5  ;;  %v290_v14 = vadd.f32 %v192_v12, %v94_v11  ;;  %v193_v16 = vld [vmem:[%s809_s1 + $0x228] sm:$0xff]  ;;  %v96_v17 = vld [vmem:[#allocation2 + $0x230] sm:$0xff]  ;;  %v97_v20 = vld [vmem:[#allocation2 + $0x238] sm:$0xff] }
  0x45   :  { %386 = vst [vmem:[#allocation5 + $0x210] sm:$0xff] %v288_v9  ;;  %v291_v18 = vadd.f32 %v193_v16, %v95_v15  ;;  %v194_v19 = vld [vmem:[%s809_s1 + $0x230] sm:$0xff]  ;;  %v195_v21 = vld [vmem:[%s809_s1 + $0x238] sm:$0xff]  ;;  %387 = vst [vmem:[#allocation5 + $0x218] sm:$0xff] %v289_v13 }
  0x46   :  { %388 = vst [vmem:[#allocation5 + $0x220] sm:$0xff] %v290_v14  ;;  %v292_v22 = vadd.f32 %v194_v19, %v96_v17  ;;  %v293_v23 = vadd.f32 %v195_v21, %v97_v20  ;;  %v98_v24 = vld [vmem:[#allocation2 + $0x240] sm:$0xff]  ;;  %v99_v26 = vld [vmem:[#allocation2 + $0x248] sm:$0xff]  ;;  %v100_v29 = vld [vmem:[#allocation2 + $0x250] sm:$0xff] }
  0x47   :  { %v196_v25 = vld [vmem:[%s809_s1 + $0x240] sm:$0xff]  ;;  %389 = vst [vmem:[#allocation5 + $0x228] sm:$0xff] %v291_v18  ;;  %v197_v28 = vld [vmem:[%s809_s1 + $0x248] sm:$0xff]  ;;  %v198_v30 = vld [vmem:[%s809_s1 + $0x250] sm:$0xff] }
  0x48   :  { %v294_v27 = vadd.f32 %v196_v25, %v98_v24  ;;  %390 = vst [vmem:[#allocation5 + $0x230] sm:$0xff] %v292_v22  ;;  %391 = vst [vmem:[#allocation5 + $0x238] sm:$0xff] %v293_v23  ;;  %v295_v31 = vadd.f32 %v197_v28, %v99_v26  ;;  %v296_v32 = vadd.f32 %v198_v30, %v100_v29  ;;  %v101_v33 = vld [vmem:[#allocation2 + $0x258] sm:$0xff]  ;;  %v102_v35 = vld [vmem:[#allocation2 + $0x260] sm:$0xff] }
  0x49   :  { %v199_v34 = vld [vmem:[%s809_s1 + $0x258] sm:$0xff]  ;;  %v200_v37 = vld [vmem:[%s809_s1 + $0x260] sm:$0xff]  ;;  %v103_v38 = vld [vmem:[#allocation2 + $0x268] sm:$0xff] }
  0x4a   :  { %392 = vst [vmem:[#allocation5 + $0x240] sm:$0xff] %v294_v27  ;;  %v297_v36 = vadd.f32 %v199_v34, %v101_v33  ;;  %v201_v39 = vld [vmem:[%s809_s1 + $0x268] sm:$0xff]  ;;  %393 = vst [vmem:[#allocation5 + $0x248] sm:$0xff] %v295_v31  ;;  %v298_v40 = vadd.f32 %v200_v37, %v102_v35  ;;  %v104_v42 = vld [vmem:[#allocation2 + $0x270] sm:$0xff] }
  0x4b   :  { %394 = vst [vmem:[#allocation5 + $0x250] sm:$0xff] %v296_v32  ;;  %v299_v41 = vadd.f32 %v201_v39, %v103_v38  ;;  %v202_v43 = vld [vmem:[%s809_s1 + $0x270] sm:$0xff]  ;;  %v105_v44 = vld [vmem:[#allocation2 + $0x278] sm:$0xff]  ;;  %v106_v47 = vld [vmem:[#allocation2 + $0x280] sm:$0xff] }
  0x4c   :  { %395 = vst [vmem:[#allocation5 + $0x258] sm:$0xff] %v297_v36  ;;  %v300_v45 = vadd.f32 %v202_v43, %v104_v42  ;;  %v203_v46 = vld [vmem:[%s809_s1 + $0x278] sm:$0xff]  ;;  %v204_v48 = vld [vmem:[%s809_s1 + $0x280] sm:$0xff]  ;;  %396 = vst [vmem:[#allocation5 + $0x260] sm:$0xff] %v298_v40 }
  0x4d   :  { %397 = vst [vmem:[#allocation5 + $0x268] sm:$0xff] %v299_v41  ;;  %v301_v49 = vadd.f32 %v203_v46, %v105_v44  ;;  %v302_v50 = vadd.f32 %v204_v48, %v106_v47  ;;  %v107_v51 = vld [vmem:[#allocation2 + $0x288] sm:$0xff]  ;;  %v108_v53 = vld [vmem:[#allocation2 + $0x290] sm:$0xff]  ;;  %v109_v56 = vld [vmem:[#allocation2 + $0x298] sm:$0xff] }
  0x4e   :  { %v205_v52 = vld [vmem:[%s809_s1 + $0x288] sm:$0xff]  ;;  %398 = vst [vmem:[#allocation5 + $0x270] sm:$0xff] %v300_v45  ;;  %v206_v55 = vld [vmem:[%s809_s1 + $0x290] sm:$0xff]  ;;  %v207_v57 = vld [vmem:[%s809_s1 + $0x298] sm:$0xff] }
  0x4f   :  { %v303_v54 = vadd.f32 %v205_v52, %v107_v51  ;;  %399 = vst [vmem:[#allocation5 + $0x278] sm:$0xff] %v301_v49  ;;  %400 = vst [vmem:[#allocation5 + $0x280] sm:$0xff] %v302_v50  ;;  %v304_v58 = vadd.f32 %v206_v55, %v108_v53  ;;  %v305_v59 = vadd.f32 %v207_v57, %v109_v56  ;;  %v110_v60 = vld [vmem:[#allocation2 + $0x2a0] sm:$0xff]  ;;  %v111_v62 = vld [vmem:[#allocation2 + $0x2a8] sm:$0xff] }
  0x50   :  { %v208_v61 = vld [vmem:[%s809_s1 + $0x2a0] sm:$0xff]  ;;  %v209_v0 = vld [vmem:[%s809_s1 + $0x2a8] sm:$0xff]  ;;  %v112_v1 = vld [vmem:[#allocation2 + $0x2b0] sm:$0xff] }
  0x51   :  { %401 = vst [vmem:[#allocation5 + $0x288] sm:$0xff] %v303_v54  ;;  %v306_v63 = vadd.f32 %v208_v61, %v110_v60  ;;  %v210_v2 = vld [vmem:[%s809_s1 + $0x2b0] sm:$0xff]  ;;  %402 = vst [vmem:[#allocation5 + $0x290] sm:$0xff] %v304_v58  ;;  %v307_v3 = vadd.f32 %v209_v0, %v111_v62  ;;  %v113_v5 = vld [vmem:[#allocation2 + $0x2b8] sm:$0xff] }
  0x52   :  { %403 = vst [vmem:[#allocation5 + $0x298] sm:$0xff] %v305_v59  ;;  %v308_v4 = vadd.f32 %v210_v2, %v112_v1  ;;  %v211_v6 = vld [vmem:[%s809_s1 + $0x2b8] sm:$0xff]  ;;  %v114_v7 = vld [vmem:[#allocation2 + $0x2c0] sm:$0xff]  ;;  %v115_v10 = vld [vmem:[#allocation2 + $0x2c8] sm:$0xff] }
  0x53   :  { %404 = vst [vmem:[#allocation5 + $0x2a0] sm:$0xff] %v306_v63  ;;  %v309_v8 = vadd.f32 %v211_v6, %v113_v5  ;;  %v212_v9 = vld [vmem:[%s809_s1 + $0x2c0] sm:$0xff]  ;;  %v213_v11 = vld [vmem:[%s809_s1 + $0x2c8] sm:$0xff]  ;;  %405 = vst [vmem:[#allocation5 + $0x2a8] sm:$0xff] %v307_v3 }
  0x54   :  { %406 = vst [vmem:[#allocation5 + $0x2b0] sm:$0xff] %v308_v4  ;;  %v310_v12 = vadd.f32 %v212_v9, %v114_v7  ;;  %v311_v13 = vadd.f32 %v213_v11, %v115_v10  ;;  %v116_v14 = vld [vmem:[#allocation2 + $0x2d0] sm:$0xff]  ;;  %v117_v16 = vld [vmem:[#allocation2 + $0x2d8] sm:$0xff]  ;;  %v118_v19 = vld [vmem:[#allocation2 + $0x2e0] sm:$0xff] }
  0x55   :  { %v214_v15 = vld [vmem:[%s809_s1 + $0x2d0] sm:$0xff]  ;;  %407 = vst [vmem:[#allocation5 + $0x2b8] sm:$0xff] %v309_v8  ;;  %v215_v18 = vld [vmem:[%s809_s1 + $0x2d8] sm:$0xff]  ;;  %v216_v20 = vld [vmem:[%s809_s1 + $0x2e0] sm:$0xff] }
  0x56   :  { %v312_v17 = vadd.f32 %v214_v15, %v116_v14  ;;  %408 = vst [vmem:[#allocation5 + $0x2c0] sm:$0xff] %v310_v12  ;;  %409 = vst [vmem:[#allocation5 + $0x2c8] sm:$0xff] %v311_v13  ;;  %v313_v21 = vadd.f32 %v215_v18, %v117_v16  ;;  %v314_v22 = vadd.f32 %v216_v20, %v118_v19  ;;  %v119_v23 = vld [vmem:[#allocation2 + $0x2e8] sm:$0xff]  ;;  %v120_v25 = vld [vmem:[#allocation2 + $0x2f0] sm:$0xff] }
  0x57   :  { %v217_v24 = vld [vmem:[%s809_s1 + $0x2e8] sm:$0xff]  ;;  %v218_v27 = vld [vmem:[%s809_s1 + $0x2f0] sm:$0xff]  ;;  %v121_v28 = vld [vmem:[#allocation2 + $0x2f8] sm:$0xff] }
  0x58   :  { %410 = vst [vmem:[#allocation5 + $0x2d0] sm:$0xff] %v312_v17  ;;  %v315_v26 = vadd.f32 %v217_v24, %v119_v23  ;;  %v219_v29 = vld [vmem:[%s809_s1 + $0x2f8] sm:$0xff]  ;;  %411 = vst [vmem:[#allocation5 + $0x2d8] sm:$0xff] %v313_v21  ;;  %v316_v30 = vadd.f32 %v218_v27, %v120_v25  ;;  %v122_v32 = vld [vmem:[#allocation2 + $0x300] sm:$0xff] }
  0x59   :  { %412 = vst [vmem:[#allocation5 + $0x2e0] sm:$0xff] %v314_v22  ;;  %v317_v31 = vadd.f32 %v219_v29, %v121_v28  ;;  %v220_v33 = vld [vmem:[%s809_s1 + $0x300] sm:$0xff]  ;;  %v123_v34 = vld [vmem:[#allocation2 + $0x308] sm:$0xff] }
  0x5a   :  { %413 = vst [vmem:[#allocation5 + $0x2e8] sm:$0xff] %v315_v26  ;;  %v318_v35 = vadd.f32 %v220_v33, %v122_v32  ;;  %v221_v36 = vld [vmem:[%s809_s1 + $0x308] sm:$0xff]  ;;  %414 = vst [vmem:[#allocation5 + $0x2f0] sm:$0xff] %v316_v30 }
  0x5b   :  { %415 = vst [vmem:[#allocation5 + $0x2f8] sm:$0xff] %v317_v31  ;;  %v319_v37 = vadd.f32 %v221_v36, %v123_v34 }
  0x5c   :  { %416 = vst [vmem:[#allocation5 + $0x300] sm:$0xff] %v318_v35 }
  0x5d   :  { %417 = vst [vmem:[#allocation5 + $0x308] sm:$0xff] %v319_v37 }
  0x5e   :  { %470 = shalt.err (!%p467_p9)
}
  0x5f   :  { %429 = dma.vmem_to_hbm [thread:$0]  %s424_s20, 12544, %s810_s2, [#allocation4], %s484_s12, %s484_s12, %s485_s13  }
  0x60   :  { %481 = dma.done.wait [#allocation4], 12544  }
  0x61   :  { %482 = vsyncadd [#allocation4], 4294954752 }
  0x62   :  { %433 = vsyncpa [#allocation3], 1 }
  0x63   :  { %434 = vsyncpa [#allocation4], 1 }

</bundles_post_ra>
